<compile_context>
chip_gen: v5e
topology: v5e:2x2
jax: 0.10.0
libtpu: 0.0.40
codegen_flags: <defaults>
</compile_context>

<pallas_src>
import jax
import jax.numpy as jnp
from jax.experimental import pallas as pl
from jax.experimental.pallas import tpu as pltpu

GROUP_SIZE = 256
NUM_BITS = 8


def _round_up(a, b):
    return ((a + b - 1) // b) * b


# ---------------------------------------------------------------------------
# Parameter setup (plain JAX): group-wise symmetric quantization, exactly like
# `compress()` in the PyTorch module (with a guard for all-zero groups).
# ---------------------------------------------------------------------------
def compress_weight(w, group_size=GROUP_SIZE, num_bits=NUM_BITS):
    out_f, in_f = w.shape
    num_groups = (in_f + group_size - 1) // group_size
    pad_len = num_groups * group_size - in_f
    w_pad = jnp.pad(w, ((0, 0), (0, pad_len)))
    data = w_pad.reshape(out_f, num_groups, group_size)
    B = 2 ** (num_bits - 1) - 1
    max_abs = jnp.max(jnp.abs(data), axis=2, keepdims=True)           # (out_f, ng, 1)
    # guard all-zero groups (PyTorch original would produce inf/NaN here)
    scale = jnp.where(max_abs > 0, B / max_abs, jnp.ones_like(max_abs))
    q = jnp.round(jnp.clip(data * scale, -B, B)).astype(jnp.int8)     # (out_f, ng, gs)
    return q, scale, (out_f, in_f)


# ---------------------------------------------------------------------------
# Pallas kernel: dequantize (int8 * per-group inv-scale) + bf16 matmul + bias.
# ---------------------------------------------------------------------------
def clinear_kernel(x_ref, wq_ref, sinv_ref, bias_ref, o_ref, acc_ref):
    k_idx = pl.program_id(2)

    @pl.when(k_idx == 0)
    def _init():
        acc_ref[...] = jnp.zeros_like(acc_ref)

    tk, tn = wq_ref.shape
    gpt = tk // GROUP_SIZE                     # groups per K tile (static)

    # per-group inverse scale rows for this K tile: (gpt, tn)
    sinv = sinv_ref[pl.ds(k_idx * gpt, gpt), :]

    wq = wq_ref[...].astype(jnp.float32)       # (tk, tn)
    if gpt == 1:
        # whole K tile is a single quantization group
        w_deq = wq * sinv                      # (tk, tn) * (1, tn)
    else:
        w_deq = (wq.reshape(gpt, GROUP_SIZE, tn) * sinv[:, None, :]).reshape(tk, tn)

    # TODO(synk): dequantized weight tile could be cached in VMEM scratch and
    # reused across M tiles (grid reorder) to avoid repeating the VPU dequant.
    w_bf = w_deq.astype(jnp.bfloat16)
    x_bf = x_ref[...].astype(jnp.bfloat16)
    acc_ref[...] += jnp.dot(x_bf, w_bf, preferred_element_type=jnp.float32)

    @pl.when(k_idx == pl.num_programs(2) - 1)
    def _finalize():
        o_ref[...] = acc_ref[...] + bias_ref[...]


def clinear_forward(x, q, scale, original_shape, bias):
    """x: (..., in_features) f32.  Returns (..., out_features) f32."""
    out_f, in_f = original_shape
    ng = q.shape[1]
    K_pad = ng * GROUP_SIZE
    N = out_f

    lead = x.shape[:-1]
    M = 1
    for d in lead:
        M *= d
    x2d = x.reshape(M, in_f).astype(jnp.float32)

    # ---- tile sizes (lane-dense output, VMEM-safe on v7x's 64 MiB) ----
    if K_pad % 1024 == 0:
        tk = 1024
    elif K_pad % 512 == 0:
        tk = 512
    else:
        tk = GROUP_SIZE
    tn = 256 if N >= 256 else _round_up(N, 128)
    N_pad = _round_up(N, tn)
    tm = 256 if M >= 256 else _round_up(M, 8)
    M_pad = _round_up(M, tm)

    # ---- kernel-layout operands (no per-element scale materialization) ----
    wq_t = q.reshape(out_f, K_pad).T                                   # (K_pad, N) int8
    inv_scale = (1.0 / scale).reshape(out_f, ng).T.astype(jnp.float32)  # (ng, N)

    x_p = jnp.zeros((M_pad, K_pad), jnp.float32).at[:M, :in_f].set(x2d)
    wq_p = jnp.zeros((K_pad, N_pad), jnp.int8).at[:, :N].set(wq_t)
    sinv_p = jnp.ones((ng, N_pad), jnp.float32).at[:, :N].set(inv_scale)
    bias_p = jnp.zeros((1, N_pad), jnp.float32).at[0, :N].set(
        bias.reshape(out_f).astype(jnp.float32))

    grid = (M_pad // tm, N_pad // tn, K_pad // tk)

    out = pl.pallas_call(
        clinear_kernel,
        out_shape=jax.ShapeDtypeStruct((M_pad, N_pad), jnp.float32),
        grid_spec=pltpu.PrefetchScalarGridSpec(
            num_scalar_prefetch=0,
            grid=grid,
            in_specs=[
                pl.BlockSpec((tm, tk), lambda i, j, k: (i, k)),   # x
                pl.BlockSpec((tk, tn), lambda i, j, k: (k, j)),   # int8 weight
                pl.BlockSpec((ng, tn), lambda i, j, k: (0, j)),   # per-group inv scale
                pl.BlockSpec((1, tn), lambda i, j, k: (0, j)),    # bias
            ],
            out_specs=pl.BlockSpec((tm, tn), lambda i, j, k: (i, j)),
            scratch_shapes=[pltpu.VMEM((tm, tn), jnp.float32)],
        ),
        compiler_params=pltpu.CompilerParams(
            dimension_semantics=("parallel", "parallel", "arbitrary"),
            vmem_limit_bytes=48 * 1024 * 1024,
        ),
    )(x_p, wq_p, sinv_p, bias_p)

    return out[:M, :N].reshape(*lead, out_f)


# ---------------------------------------------------------------------------
# Pure-JAX reference (mirrors PyTorch compress -> decompress -> F.linear).
# ---------------------------------------------------------------------------
def clinear_reference(x, q, scale, original_shape, bias):
    out_f, in_f = original_shape
    ng, gs = q.shape[1], q.shape[2]
    w_deq = (q.astype(jnp.float32) / scale).reshape(out_f, ng * gs)[:, :in_f]
    return jnp.einsum("...k,nk->...n", x, w_deq) + bias


if __name__ == "__main__":
    key = jax.random.PRNGKey(0)
    k_w, k_b, k_x = jax.random.split(key, 3)

    batch, seq = 2, 8
    in_features, out_features = 64, 32

    weight = jax.random.normal(k_w, (out_features, in_features), dtype=jnp.float32)
    bias = jax.random.normal(k_b, (out_features,), dtype=jnp.float32)
    x = jax.random.normal(k_x, (batch, seq, in_features), dtype=jnp.float32)

    # "CLinear.__init__": compress the weight once.
    q, scale, orig_shape = compress_weight(weight)

    # "CLinear.forward": in-kernel dequant + linear.
    y = clinear_forward(x, q, scale, orig_shape, bias)
    y = jax.block_until_ready(y)

    y_ref = clinear_reference(x, q, scale, orig_shape, bias)
    assert y.shape == (batch, seq, out_features)
    # bf16 MXU inputs => tolerance loosened vs the f32 reference (well inside
    # the 8-bit quantization noise).
    assert jnp.allclose(y, y_ref, atol=0.15, rtol=0.02), float(
        jnp.max(jnp.abs(y - y_ref)))

    print("KERNEL_OK")
</pallas_src>

<mosaic_0001>
module attributes {stable_mosaic.version = 11 : i64} {
  func.func @clinear_kernel(%arg0: i32, %arg1: i32, %arg2: i32, %arg3: memref<16x256xf32, #tpu.memory_space<vmem>>, %arg4: memref<256x128xi8, #tpu.memory_space<vmem>>, %arg5: memref<1x128xf32, #tpu.memory_space<vmem>>, %arg6: memref<1x128xf32, #tpu.memory_space<vmem>>, %arg7: memref<16x128xf32, #tpu.memory_space<vmem>>, %arg8: memref<16x128xf32, #tpu.memory_space<vmem>>) attributes {dimension_semantics = [#tpu.dimension_semantics<parallel>, #tpu.dimension_semantics<parallel>, #tpu.dimension_semantics<arbitrary>], iteration_bounds = array<i64: 1, 1, 1>, scalar_prefetch = 0 : i64, scratch_operands = 1 : i64, tpu.core_type = #tpu.core_type<tc>, window_params = [{transform_indices = @transform_0, window_bounds = array<i64: 16, 256>}, {transform_indices = @transform_1, window_bounds = array<i64: 256, 128>}, {transform_indices = @transform_2, window_bounds = array<i64: 1, 128>}, {transform_indices = @transform_3, window_bounds = array<i64: 1, 128>}, {transform_indices = @transform_4, window_bounds = array<i64: 16, 128>}]} {
    %c0_i32 = arith.constant 0 : i32
    %0 = arith.cmpi eq, %arg2, %c0_i32 : i32
    %1 = arith.extui %0 : i1 to i32
    %c0_i32_0 = arith.constant 0 : i32
    %2 = arith.cmpi ne, %1, %c0_i32_0 : i32
    scf.if %2 {
      %cst_11 = arith.constant 0.000000e+00 : f32
      %20 = vector.broadcast %cst_11 : f32 to vector<16x128xf32>
      %c0_12 = arith.constant 0 : index
      %c0_13 = arith.constant 0 : index
      %21 = vector.load %arg8[%c0_12, %c0_13] : memref<16x128xf32, #tpu.memory_space<vmem>>, vector<16x128xf32>
      tpu.vector_store %arg8[%c0_12, %c0_13], %20 {strides = array<i32>} : memref<16x128xf32, #tpu.memory_space<vmem>>, vector<16x128xf32>,
    } else {
    }
    %c1_i32 = arith.constant 1 : i32
    %3 = arith.muli %arg2, %c1_i32 : i32
    %4 = arith.index_cast %3 : i32 to index
    %c0 = arith.constant 0 : index
    %5 = vector.load %arg5[%4, %c0] : memref<1x128xf32, #tpu.memory_space<vmem>>, vector<1x128xf32>
    %c0_1 = arith.constant 0 : index
    %c0_2 = arith.constant 0 : index
    %6 = vector.load %arg4[%c0_1, %c0_2] : memref<256x128xi8, #tpu.memory_space<vmem>>, vector<256x128xi8>
    %7 = arith.sitofp %6 : vector<256x128xi8> to vector<256x128xf32>
    %8 = vector.broadcast %5 : vector<1x128xf32> to vector<256x128xf32>
    %9 = arith.mulf %7, %8 : vector<256x128xf32>
    %10 = arith.truncf %9 : vector<256x128xf32> to vector<256x128xbf16>
    %c0_3 = arith.constant 0 : index
    %c0_4 = arith.constant 0 : index
    %11 = vector.load %arg3[%c0_3, %c0_4] : memref<16x256xf32, #tpu.memory_space<vmem>>, vector<16x256xf32>
    %12 = arith.truncf %11 : vector<16x256xf32> to vector<16x256xbf16>
    %c0_5 = arith.constant 0 : index
    %c0_6 = arith.constant 0 : index
    %13 = vector.load %arg8[%c0_5, %c0_6] : memref<16x128xf32, #tpu.memory_space<vmem>>, vector<16x128xf32>
    %cst = arith.constant dense<0.000000e+00> : vector<16x128xf32>
    %14 = tpu.matmul %12, %10, %cst {dimension_numbers = #tpu.dot_dimension_numbers<[1], [0], [0], [1], [0, 0, 1, 1], [], []>} : vector<16x256xbf16>, vector<256x128xbf16>, vector<16x128xf32> -> vector<16x128xf32>
    %15 = arith.addf %13, %14 : vector<16x128xf32>
    %c0_7 = arith.constant 0 : index
    %c0_8 = arith.constant 0 : index
    %16 = vector.load %arg8[%c0_7, %c0_8] : memref<16x128xf32, #tpu.memory_space<vmem>>, vector<16x128xf32>
    tpu.vector_store %arg8[%c0_7, %c0_8], %15 {strides = array<i32>} : memref<16x128xf32, #tpu.memory_space<vmem>>, vector<16x128xf32>,
    %c0_i32_9 = arith.constant 0 : i32
    %17 = arith.cmpi eq, %arg2, %c0_i32_9 : i32
    %18 = arith.extui %17 : i1 to i32
    %c0_i32_10 = arith.constant 0 : i32
    %19 = arith.cmpi ne, %18, %c0_i32_10 : i32
    scf.if %19 {
      %c0_11 = arith.constant 0 : index
      %c0_12 = arith.constant 0 : index
      %20 = vector.load %arg8[%c0_11, %c0_12] : memref<16x128xf32, #tpu.memory_space<vmem>>, vector<16x128xf32>
      %c0_13 = arith.constant 0 : index
      %c0_14 = arith.constant 0 : index
      %21 = vector.load %arg6[%c0_13, %c0_14] : memref<1x128xf32, #tpu.memory_space<vmem>>, vector<1x128xf32>
      %22 = vector.broadcast %21 : vector<1x128xf32> to vector<16x128xf32>
      %23 = arith.addf %20, %22 : vector<16x128xf32>
      %c0_15 = arith.constant 0 : index
      %c0_16 = arith.constant 0 : index
      %24 = vector.load %arg7[%c0_15, %c0_16] : memref<16x128xf32, #tpu.memory_space<vmem>>, vector<16x128xf32>
      tpu.vector_store %arg7[%c0_15, %c0_16], %23 {strides = array<i32>} : memref<16x128xf32, #tpu.memory_space<vmem>>, vector<16x128xf32>,
    } else {
    }
    return
  }
  func.func @transform_0(%arg0: i32, %arg1: i32, %arg2: i32) -> (i32, i32) {
    %c0_i32 = arith.constant 0 : i32
    return %arg0, %arg2 : i32, i32
  }
  func.func @transform_1(%arg0: i32, %arg1: i32, %arg2: i32) -> (i32, i32) {
    %c0_i32 = arith.constant 0 : i32
    return %arg2, %arg1 : i32, i32
  }
  func.func @transform_2(%arg0: i32, %arg1: i32, %arg2: i32) -> (i32, i32) {
    %c0_i32 = arith.constant 0 : i32
    %c0_i32_0 = arith.constant 0 : i32
    return %c0_i32, %arg1 : i32, i32
  }
  func.func @transform_3(%arg0: i32, %arg1: i32, %arg2: i32) -> (i32, i32) {
    %c0_i32 = arith.constant 0 : i32
    %c0_i32_0 = arith.constant 0 : i32
    return %c0_i32, %arg1 : i32, i32
  }
  func.func @transform_4(%arg0: i32, %arg1: i32, %arg2: i32) -> (i32, i32) {
    %c0_i32 = arith.constant 0 : i32
    return %arg0, %arg1 : i32, i32
  }
}

</mosaic_0001>

<bundles_post_ra>
// kernel: tpu_custom_call.1
= control target key start
LH: loop header
LB: loop body
LE: loop exit
PB: predicated region body
PF: predicated region fallthrough
CT: control target
= control target key end

     0   :  { %9 = vsyncpa [#allocation4], 0  ;;  %s427_s0 = inlined_call_operand.hbm [shape: f32[16,256], index: 0, kind: input, shape index: {}]   ;;  %s428_s1 = inlined_call_operand.hbm [shape: s8[256,128], index: 1, kind: input, shape index: {}]   ;;  %s429_s2 = inlined_call_operand.vmem [shape: f32[1,128], index: 2, kind: input, shape index: {}]   ;;  %s430_s3 = inlined_call_operand.vmem [shape: f32[1,128], index: 3, kind: input, shape index: {}]   ;;  %s431_s4 = inlined_call_operand.hbm [shape: f32[16,128], index: 4, kind: output, shape index: {}]  }
   0x1   :  { %10 = vsyncpa [#allocation7], 0 }
   0x2   :  { %11 = vsyncpa [#allocation5], 0  ;;  %s16_s17 = sshll.u32 %s427_s0, 4  ;;  %s340_s18 = smov [#allocation3]   ;;  %s17_s17 = int_to_ptr.hbm [resolvable:$true] %s16_s17 }
   0x3   :  { %s18_s19 = sshll.u32 %s340_s18, 4  ;;  %s29_s22 = sshll.u32 %s428_s1, 4  ;;  %s19_s19 = int_to_ptr.vmem [resolvable:$true] %s18_s19  ;;  %s30_s22 = int_to_ptr.hbm [resolvable:$true] %s29_s22 }
   0x4   :  { %s341_s23 = smov 256   ;;  %s342_s24 = smov 16  }
   0x5   :  { %24 = dma.hbm_to_vmem [thread:$0]  %s17_s17, 512, %s19_s19, [#allocation4], %s341_s23, %s341_s23, %s342_s24  }
   0x6   :  { %s343_s25 = smov [#allocation6]   ;;  %s344_s27 = smov 128  }
   0x7   :  { %s31_s26 = sshll.u32 %s343_s25, 4  ;;  %s345_s28 = smov 8   ;;  %s32_s26 = int_to_ptr.vmem [resolvable:$true] %s31_s26 }
   0x8   :  { %37 = dma.hbm_to_vmem [thread:$0]  %s30_s22, 1024, %s32_s26, [#allocation7], %s344_s27, %s344_s27, %s345_s28  }
   0x9   :  { %334 = dma.done.wait [#allocation4], 512  }
   0xa   :  { %335 = vsyncadd [#allocation4], 4294966784 }
   0xb   :  { %336 = dma.done.wait [#allocation7], 1024  }
   0xc   :  { %337 = vsyncadd [#allocation7], 4294966272  ;;  %v60_v0 = vld [vmem:[#allocation6 + $0x18] sm:$0xff]  ;;  %v384_v1 = vld [vmem:[%s429_s2] ss:$0 sm:$0xff]  ;;  %s346_s30 = smov [#allocation8]  }
   0xd   :  { %v79_v2 = vunpack.c.2.s8 %v60_v0  ;;  %v80_v3 = vunpack.c.3.s8 %v60_v0  ;;  %v64_v4 = vld [vmem:[#allocation6 + $0x38] sm:$0xff]  ;;  %v77_v5 = vunpack.c.0.s8 %v60_v0  ;;  %v78_v6 = vunpack.c.1.s8 %v60_v0  ;;  %v59_v19 = vld [vmem:[#allocation6 + $0x10] sm:$0xff]  ;;  %v58_v45 = vld [vmem:[#allocation6 + $0x8] sm:$0xff]  ;;  %s237_s5 = sshll.u32 %s346_s30, 4  ;;  %s239_s8 = sshll.u32 %s431_s4, 4  ;;  %s238_s5 = int_to_ptr.vmem [resolvable:$true] %s237_s5  ;;  %s240_s8 = int_to_ptr.hbm [resolvable:$true] %s239_s8 }
   0xe   :  { %v95_v7 = vunpack.c.2.s8 %v64_v4  ;;  %v96_v8 = vunpack.c.3.s8 %v64_v4  ;;  %v93_v9 = vunpack.c.0.s8 %v64_v4  ;;  %v94_v10 = vunpack.c.1.s8 %v64_v4  ;;  %v63_v24 = vld [vmem:[#allocation6 + $0x30] sm:$0xff]  ;;  %v62_v54 = vld [vmem:[#allocation6 + $0x28] sm:$0xff] }
   0xf   :  { %v111_v11 = vcvt.s32.f32 %v79_v2  ;;  %v112_v12 = vcvt.s32.f32 %v80_v3  ;;  %v109_v13 = vcvt.s32.f32 %v77_v5  ;;  %v110_v14 = vcvt.s32.f32 %v78_v6 }
  0x10   :  { %v127_v15 = vcvt.s32.f32 %v95_v7  ;;  %v128_v16 = vcvt.s32.f32 %v96_v8  ;;  %v125_v17 = vcvt.s32.f32 %v93_v9  ;;  %v126_v18 = vcvt.s32.f32 %v94_v10  ;;  %v57_v8 = vld [vmem:[#allocation6] sm:$0xff] }
  0x11   :  { %v146_v20 = vmul.f32 %v384_v1, %v111_v11  ;;  %v147_v21 = vmul.f32 %v384_v1, %v112_v12  ;;  %v144_v22 = vmul.f32 %v384_v1, %v109_v13  ;;  %v145_v23 = vmul.f32 %v384_v1, %v110_v14 }
  0x12   :  { %v162_v25 = vmul.f32 %v384_v1, %v127_v15  ;;  %v163_v26 = vmul.f32 %v384_v1, %v128_v16  ;;  %v160_v27 = vmul.f32 %v384_v1, %v125_v17  ;;  %v161_v28 = vmul.f32 %v384_v1, %v126_v18 }
  0x13   :  { %v171_v29 = vpack.c.bf16 %v147_v21, %v146_v20  ;;  %v170_v30 = vpack.c.bf16 %v145_v23, %v144_v22  ;;  %v75_v31 = vunpack.c.2.s8 %v59_v19  ;;  %v76_v32 = vunpack.c.3.s8 %v59_v19  ;;  %v61_v21 = vld [vmem:[#allocation6 + $0x20] sm:$0xff] }
  0x14   :  { %v179_v33 = vpack.c.bf16 %v163_v26, %v162_v25  ;;  %v178_v34 = vpack.c.bf16 %v161_v28, %v160_v27  ;;  %v91_v35 = vunpack.c.2.s8 %v63_v24  ;;  %v92_v36 = vunpack.c.3.s8 %v63_v24 }
  0x15   :  { %188 = vmatpush.bf16.msra.mxu0 %v171_v29  ;;  %v107_v37 = vcvt.s32.f32 %v75_v31  ;;  %v108_v38 = vcvt.s32.f32 %v76_v32  ;;  %v73_v39 = vunpack.c.0.s8 %v59_v19  ;;  %v74_v40 = vunpack.c.1.s8 %v59_v19 }
  0x16   :  { %202 = vmatpush.bf16.msra.mxu1 %v179_v33  ;;  %v123_v41 = vcvt.s32.f32 %v91_v35  ;;  %v124_v42 = vcvt.s32.f32 %v92_v36  ;;  %v89_v43 = vunpack.c.0.s8 %v63_v24  ;;  %v90_v44 = vunpack.c.1.s8 %v63_v24 }
  0x17   :  { %v142_v46 = vmul.f32 %v384_v1, %v107_v37  ;;  %v143_v47 = vmul.f32 %v384_v1, %v108_v38  ;;  %v105_v48 = vcvt.s32.f32 %v73_v39  ;;  %v106_v49 = vcvt.s32.f32 %v74_v40 }
  0x18   :  { %v158_v50 = vmul.f32 %v384_v1, %v123_v41  ;;  %v159_v51 = vmul.f32 %v384_v1, %v124_v42  ;;  %v121_v52 = vcvt.s32.f32 %v89_v43  ;;  %v122_v53 = vcvt.s32.f32 %v90_v44 }
  0x19   :  { %189 = vmatpush.bf16.msra.mxu0 %v170_v30  ;;  %v169_v55 = vpack.c.bf16 %v143_v47, %v142_v46  ;;  %v140_v56 = vmul.f32 %v384_v1, %v105_v48  ;;  %v141_v57 = vmul.f32 %v384_v1, %v106_v49  ;;  %v71_v58 = vunpack.c.2.s8 %v58_v45 }
  0x1a   :  { %203 = vmatpush.bf16.msra.mxu1 %v178_v34  ;;  %v177_v59 = vpack.c.bf16 %v159_v51, %v158_v50  ;;  %v156_v60 = vmul.f32 %v384_v1, %v121_v52  ;;  %v157_v61 = vmul.f32 %v384_v1, %v122_v53  ;;  %v72_v62 = vunpack.c.3.s8 %v58_v45 }
  0x1b   :  { %v168_v63 = vpack.c.bf16 %v141_v57, %v140_v56  ;;  %v103_v0 = vcvt.s32.f32 %v71_v58  ;;  %v87_v2 = vunpack.c.2.s8 %v62_v54  ;;  %v88_v3 = vunpack.c.3.s8 %v62_v54  ;;  %v180_v57 = vld [vmem:[#allocation3] sm:$0xff]  ;;  %v182_v58 = vld [vmem:[#allocation3 + $0x10] sm:$0xff] }
  0x1c   :  { %v176_v4 = vpack.c.bf16 %v157_v61, %v156_v60  ;;  %v104_v5 = vcvt.s32.f32 %v72_v62  ;;  %v69_v6 = vunpack.c.0.s8 %v58_v45  ;;  %v70_v7 = vunpack.c.1.s8 %v58_v45  ;;  %v181_v60 = vld [vmem:[#allocation3 + $0x8] sm:$0xff]  ;;  %v183_v61 = vld [vmem:[#allocation3 + $0x18] sm:$0xff] }
  0x1d   :  { %190 = vmatpush.bf16.msra.mxu0 %v169_v55  ;;  %v138_v9 = vmul.f32 %v384_v1, %v103_v0  ;;  %v119_v10 = vcvt.s32.f32 %v87_v2  ;;  %v120_v11 = vcvt.s32.f32 %v88_v3  ;;  %v85_v12 = vunpack.c.0.s8 %v62_v54  ;;  %v261_v2 = vld [vmem:[%s430_s3] ss:$0 sm:$0xff] }
  0x1e   :  { %204 = vmatpush.bf16.msra.mxu1 %v177_v59  ;;  %v139_v13 = vmul.f32 %v384_v1, %v104_v5  ;;  %v101_v14 = vcvt.s32.f32 %v69_v6  ;;  %v102_v15 = vcvt.s32.f32 %v70_v7  ;;  %v86_v16 = vunpack.c.1.s8 %v62_v54 }
  0x1f   :  { %v154_v17 = vmul.f32 %v384_v1, %v119_v10  ;;  %v155_v18 = vmul.f32 %v384_v1, %v120_v11  ;;  %v117_v19 = vcvt.s32.f32 %v85_v12  ;;  %v67_v20 = vunpack.c.2.s8 %v57_v8 }
  0x20   :  { %v136_v22 = vmul.f32 %v384_v1, %v101_v14  ;;  %v137_v23 = vmul.f32 %v384_v1, %v102_v15  ;;  %v118_v24 = vcvt.s32.f32 %v86_v16  ;;  %v167_v25 = vpack.c.bf16 %v139_v13, %v138_v9 }
  0x21   :  { %191 = vmatpush.bf16.msra.mxu0 %v168_v63  ;;  %v175_v26 = vpack.c.bf16 %v155_v18, %v154_v17  ;;  %v68_v27 = vunpack.c.3.s8 %v57_v8  ;;  %v99_v28 = vcvt.s32.f32 %v67_v20  ;;  %v152_v29 = vmul.f32 %v384_v1, %v117_v19 }
  0x22   :  { %205 = vmatpush.bf16.msra.mxu1 %v176_v4  ;;  %v153_v30 = vmul.f32 %v384_v1, %v118_v24  ;;  %v83_v31 = vunpack.c.2.s8 %v61_v21  ;;  %v84_v32 = vunpack.c.3.s8 %v61_v21  ;;  %v166_v33 = vpack.c.bf16 %v137_v23, %v136_v22 }
  0x23   :  { %v100_v34 = vcvt.s32.f32 %v68_v27  ;;  %v65_v35 = vunpack.c.0.s8 %v57_v8  ;;  %v66_v36 = vunpack.c.1.s8 %v57_v8  ;;  %v134_v37 = vmul.f32 %v384_v1, %v99_v28 }
  0x24   :  { %v115_v38 = vcvt.s32.f32 %v83_v31  ;;  %v116_v39 = vcvt.s32.f32 %v84_v32  ;;  %v81_v40 = vunpack.c.0.s8 %v61_v21  ;;  %v82_v44 = vunpack.c.1.s8 %v61_v21 }
  0x25   :  { %192 = vmatpush.bf16.msra.mxu0 %v167_v25  ;;  %v135_v41 = vmul.f32 %v384_v1, %v100_v34  ;;  %v97_v42 = vcvt.s32.f32 %v65_v35  ;;  %v98_v43 = vcvt.s32.f32 %v66_v36  ;;  %v174_v45 = vpack.c.bf16 %v153_v30, %v152_v29 }
  0x26   :  { %206 = vmatpush.bf16.msra.mxu1 %v175_v26  ;;  %v150_v46 = vmul.f32 %v384_v1, %v115_v38  ;;  %v151_v47 = vmul.f32 %v384_v1, %v116_v39  ;;  %v113_v48 = vcvt.s32.f32 %v81_v40  ;;  %v114_v49 = vcvt.s32.f32 %v82_v44 }
  0x27   :  { %v165_v50 = vpack.c.bf16 %v135_v41, %v134_v37  ;;  %v132_v51 = vmul.f32 %v384_v1, %v97_v42  ;;  %v133_v52 = vmul.f32 %v384_v1, %v98_v43  ;;  %v184_v62 = vpack.c.bf16 %v182_v58, %v180_v57 }
  0x28   :  { %v173_v53 = vpack.c.bf16 %v151_v47, %v150_v46  ;;  %v148_v54 = vmul.f32 %v384_v1, %v113_v48  ;;  %v149_v55 = vmul.f32 %v384_v1, %v114_v49  ;;  %v185_v63 = vpack.c.bf16 %v183_v61, %v181_v60 }
  0x29   :  { %193 = vmatpush.bf16.msra.mxu0 %v166_v33  ;;  %v164_v56 = vpack.c.bf16 %v133_v52, %v132_v51 }
  0x2a   :  { %207 = vmatpush.bf16.msra.mxu1 %v174_v45  ;;  %v172_v59 = vpack.c.bf16 %v149_v55, %v148_v54 }
  0x2d   :  { %194 = vmatpush.bf16.msra.mxu0 %v165_v50 }
  0x2e   :  { %208 = vmatpush.bf16.msra.mxu1 %v173_v53 }
  0x31   :  { %195 = vmatpush.bf16.msra.mxu0 %v164_v56 }
  0x32   :  { %209 = vmatpush.bf16.msra.mxu1 %v172_v59 }
  0x34   :  { %196 = vmatmul.bf16.vlgmr.msra.gmra.mxu0 %v184_v62 }
  0x35   :  { %210 = vmatmul.bf16.vlgmr.msra.gmra.mxu1 %v185_v63 }
  0xb1   :  { %v197_v0 = vpop.f32.mrf.mxu0 }
  0xb2   :  { %v211_v1 = vpop.f32.mrf.mxu1 }
  0xb3   :  { %v212_v3 = vadd.f32 %v211_v1, %v197_v0 }
  0xb5   :  { %v229_v4 = vadd.f32 %v261_v2, %v212_v3 }
  0xb7   :  { %231 = vst [vmem:[#allocation8] sm:$0xff] %v229_v4 }
  0xb9   :  { %v199_v5 = vpop.f32.mrf.mxu0 }
  0xba   :  { %v213_v6 = vpop.f32.mrf.mxu1 }
  0xbb   :  { %v214_v7 = vadd.f32 %v213_v6, %v199_v5 }
  0xbd   :  { %v230_v8 = vadd.f32 %v261_v2, %v214_v7 }
  0xbf   :  { %232 = vst [vmem:[#allocation8 + $0x8] sm:$0xff] %v230_v8 }
  0xc0   :  { %245 = dma.vmem_to_hbm [thread:$0]  %s238_s5, 256, %s240_s8, [#allocation5], %s344_s27, %s344_s27, %s345_s28  }
  0xc1   :  { %338 = dma.done.wait [#allocation5], 256  }
  0xc2   :  { %339 = vsyncadd [#allocation5], 4294967040 }
  0xc3   :  { %250 = vsyncpa [#allocation4], 1 }
  0xc4   :  { %251 = vsyncpa [#allocation7], 1 }
  0xc5   :  { %252 = vsyncpa [#allocation5], 1 }

</bundles_post_ra>
